<compile_context>
chip_gen: v7x
topology: tpu7x:2x2x1
jax: 0.10.0
libtpu: 0.0.40
codegen_flags: <defaults>
</compile_context>

<pallas_src>
import functools

import jax
import jax.numpy as jnp
from jax.experimental import pallas as pl
from jax.experimental.pallas import tpu as pltpu

LANES = 128
SUBLANES = 8


def _mean_diff_kernel(x_ref, y_ref, o_ref, acc_ref, *,
                      rows_per_tile, steps_per_core, n_rows, need_mask):
    c = pl.program_id(0)   # outer "parallel" (per-core) index
    i = pl.program_id(1)   # sequential reduction step for this core

    @pl.when(i == 0)
    def _():
        acc_ref[...] = jnp.zeros_like(acc_ref)

    # Hot path: cast in VMEM (inputs may be bf16/f16 in HBM), subtract, fold
    # the (rows_per_tile, 128) tile into a lane-dense (8, 128) accumulator
    # using pure VPU adds -- no per-step cross-lane (XLU) reduce, no (1,1)
    # sub-vreg read-modify-write chain.
    diff = x_ref[...].astype(jnp.float32) - y_ref[...].astype(jnp.float32)

    if need_mask:
        row0 = (c * steps_per_core + i) * rows_per_tile
        row_ids = row0 + jax.lax.broadcasted_iota(jnp.int32, diff.shape, 0)
        diff = jnp.where(row_ids < n_rows, diff, 0.0)

    acc_ref[...] += diff.reshape(
        rows_per_tile // SUBLANES, SUBLANES, LANES).sum(axis=0)

    # Only the last step of each core writes its lane-dense partial out.
    @pl.when(i == pl.num_programs(1) - 1)
    def _():
        o_ref[...] = acc_ref[...].reshape(o_ref.shape)


def mean_diff(x, y, *, rows_per_tile=1024):
    """mean(x - y) over all elements (equivalent to the torch Loss.forward)."""
    assert x.shape == y.shape, "input and target must have the same shape"
    n = x.size

    # Flatten (free for contiguous tensors).  Pad only the ragged lane tail
    # (< 128 elements); padded slots are zero in BOTH operands -> contribute 0.
    xf = jnp.ravel(x)
    yf = jnp.ravel(y)
    rem = n % LANES
    if rem:
        pad = LANES - rem
        xf = jnp.pad(xf, (0, pad))
        yf = jnp.pad(yf, (0, pad))
    rows = xf.size // LANES
    x2 = xf.reshape(rows, LANES)
    y2 = yf.reshape(rows, LANES)

    # Tile rows: multiple of 8 sublanes, shrunk to a single tile for tiny
    # inputs (small-input fast path: grid collapses to one step).
    rpt = max(SUBLANES, (rows_per_tile // SUBLANES) * SUBLANES)
    rpt = min(rpt, pl.cdiv(rows, SUBLANES) * SUBLANES)

    total_steps = pl.cdiv(rows, rpt)
    # Leading "parallel" axis: v7x megacore splits the row range across its two
    # TensorCores; harmless (sequential) on v5e/v6e.
    num_cores = 2 if total_steps >= 2 else 1
    steps_per_core = pl.cdiv(total_steps, num_cores)
    need_mask = (num_cores * steps_per_core * rpt) != rows

    def in_map(c, i):
        # Clamp so any dummy trailing step of the second core re-reads the last
        # in-bounds block; its contribution is masked to zero inside the kernel.
        return (jnp.minimum(c * steps_per_core + i, total_steps - 1), 0)

    kernel = functools.partial(
        _mean_diff_kernel,
        rows_per_tile=rpt,
        steps_per_core=steps_per_core,
        n_rows=rows,
        need_mask=need_mask,
    )

    partials = pl.pallas_call(
        kernel,
        out_shape=jax.ShapeDtypeStruct((num_cores, SUBLANES, LANES), jnp.float32),
        grid_spec=pltpu.PrefetchScalarGridSpec(
            num_scalar_prefetch=0,
            grid=(num_cores, steps_per_core),
            in_specs=[
                pl.BlockSpec((rpt, LANES), in_map),
                pl.BlockSpec((rpt, LANES), in_map),
            ],
            out_specs=pl.BlockSpec((1, SUBLANES, LANES), lambda c, i: (c, 0, 0)),
            scratch_shapes=[pltpu.VMEM((SUBLANES, LANES), jnp.float32)],
        ),
        compiler_params=pltpu.CompilerParams(
            dimension_semantics=("parallel", "arbitrary"),
        ),
    )(x2, y2)

    # Single cheap cross-lane reduce + divide, once, outside the hot loop.
    return jnp.sum(partials) / jnp.float32(n)


if __name__ == "__main__":
    key = jax.random.PRNGKey(0)
    k1, k2, k3, k4 = jax.random.split(key, 4)

    # Primary shape from the test module (NCHW input / target pair).
    x = jax.random.normal(k1, (2, 4, 16, 16), dtype=jnp.float32)
    t = jax.random.normal(k2, (2, 4, 16, 16), dtype=jnp.float32)
    out = mean_diff(x, t)
    jax.block_until_ready(out)
    ref = jnp.mean(x.reshape(-1) - t.reshape(-1))
    assert jnp.allclose(out, ref, atol=1e-5, rtol=1e-4), (out, ref)

    # Multi-step / two-core grid path (small tile forces several grid steps).
    x2 = jax.random.normal(k3, (2, 8, 64, 64), dtype=jnp.float32)
    t2 = jax.random.normal(k4, (2, 8, 64, 64), dtype=jnp.float32)
    out2 = mean_diff(x2, t2, rows_per_tile=64)
    jax.block_until_ready(out2)
    ref2 = jnp.mean(x2.reshape(-1) - t2.reshape(-1))
    assert jnp.allclose(out2, ref2, atol=1e-5, rtol=1e-4), (out2, ref2)

    # Ragged element count (not a multiple of 128): exercises in-kernel mask.
    x3 = jax.random.normal(k1, (3, 5, 7, 11), dtype=jnp.float32)
    t3 = jax.random.normal(k2, (3, 5, 7, 11), dtype=jnp.float32)
    out3 = mean_diff(x3, t3)
    jax.block_until_ready(out3)
    ref3 = jnp.mean(x3.reshape(-1) - t3.reshape(-1))
    assert jnp.allclose(out3, ref3, atol=1e-5, rtol=1e-4), (out3, ref3)

    # Odd step count: exercises the clamped dummy step on the second core.
    x4 = jax.random.normal(k3, (3, 8, 128), dtype=jnp.float32)
    t4 = jax.random.normal(k4, (3, 8, 128), dtype=jnp.float32)
    out4 = mean_diff(x4, t4, rows_per_tile=8)
    jax.block_until_ready(out4)
    ref4 = jnp.mean(x4.reshape(-1) - t4.reshape(-1))
    assert jnp.allclose(out4, ref4, atol=1e-5, rtol=1e-4), (out4, ref4)

    # Narrow dtype stays narrow in HBM; cast to f32 happens per-tile in VMEM.
    x5 = x.astype(jnp.bfloat16)
    t5 = t.astype(jnp.bfloat16)
    out5 = mean_diff(x5, t5)
    jax.block_until_ready(out5)
    ref5 = jnp.mean(x5.astype(jnp.float32) - t5.astype(jnp.float32))
    assert jnp.allclose(out5, ref5, atol=1e-5, rtol=1e-4), (out5, ref5)

    print("KERNEL_OK")
</pallas_src>

<mosaic_0001>
module attributes {stable_mosaic.version = 11 : i64} {
  func.func @_mean_diff_kernel(%arg0: i32, %arg1: i32, %arg2: memref<16x128xf32, #tpu.memory_space<vmem>>, %arg3: memref<16x128xf32, #tpu.memory_space<vmem>>, %arg4: memref<1x8x128xf32, #tpu.memory_space<vmem>>, %arg5: memref<8x128xf32, #tpu.memory_space<vmem>>) attributes {dimension_semantics = [#tpu.dimension_semantics<parallel>, #tpu.dimension_semantics<arbitrary>], iteration_bounds = array<i64: 1, 1>, scalar_prefetch = 0 : i64, scratch_operands = 1 : i64, tpu.core_type = #tpu.core_type<tc>, window_params = [{transform_indices = @transform_0, window_bounds = array<i64: 16, 128>}, {transform_indices = @transform_1, window_bounds = array<i64: 16, 128>}, {transform_indices = @transform_2, window_bounds = array<i64: 1, 8, 128>}]} {
    %c0_i32 = arith.constant 0 : i32
    %0 = arith.cmpi eq, %arg1, %c0_i32 : i32
    %1 = arith.extui %0 : i1 to i32
    %c0_i32_0 = arith.constant 0 : i32
    %2 = arith.cmpi ne, %1, %c0_i32_0 : i32
    scf.if %2 {
      %cst_10 = arith.constant 0.000000e+00 : f32
      %14 = vector.broadcast %cst_10 : f32 to vector<8x128xf32>
      %c0_11 = arith.constant 0 : index
      %c0_12 = arith.constant 0 : index
      %15 = vector.load %arg5[%c0_11, %c0_12] : memref<8x128xf32, #tpu.memory_space<vmem>>, vector<8x128xf32>
      tpu.vector_store %arg5[%c0_11, %c0_12], %14 {strides = array<i32>} : memref<8x128xf32, #tpu.memory_space<vmem>>, vector<8x128xf32>,
    } else {
    }
    %c0 = arith.constant 0 : index
    %c0_1 = arith.constant 0 : index
    %3 = vector.load %arg2[%c0, %c0_1] : memref<16x128xf32, #tpu.memory_space<vmem>>, vector<16x128xf32>
    %c0_2 = arith.constant 0 : index
    %c0_3 = arith.constant 0 : index
    %4 = vector.load %arg3[%c0_2, %c0_3] : memref<16x128xf32, #tpu.memory_space<vmem>>, vector<16x128xf32>
    %5 = arith.subf %3, %4 : vector<16x128xf32>
    %c0_4 = arith.constant 0 : index
    %c0_5 = arith.constant 0 : index
    %6 = vector.load %arg5[%c0_4, %c0_5] : memref<8x128xf32, #tpu.memory_space<vmem>>, vector<8x128xf32>
    %7 = vector.shape_cast %5 : vector<16x128xf32> to vector<2x8x128xf32>
    %cst = arith.constant dense<0.000000e+00> : vector<8x128xf32>
    %8 = vector.multi_reduction <add>, %7, %cst [0] : vector<2x8x128xf32> to vector<8x128xf32>
    %9 = arith.addf %6, %8 : vector<8x128xf32>
    %c0_6 = arith.constant 0 : index
    %c0_7 = arith.constant 0 : index
    %10 = vector.load %arg5[%c0_6, %c0_7] : memref<8x128xf32, #tpu.memory_space<vmem>>, vector<8x128xf32>
    tpu.vector_store %arg5[%c0_6, %c0_7], %9 {strides = array<i32>} : memref<8x128xf32, #tpu.memory_space<vmem>>, vector<8x128xf32>,
    %c0_i32_8 = arith.constant 0 : i32
    %11 = arith.cmpi eq, %arg1, %c0_i32_8 : i32
    %12 = arith.extui %11 : i1 to i32
    %c0_i32_9 = arith.constant 0 : i32
    %13 = arith.cmpi ne, %12, %c0_i32_9 : i32
    scf.if %13 {
      %c0_10 = arith.constant 0 : index
      %c0_11 = arith.constant 0 : index
      %14 = vector.load %arg5[%c0_10, %c0_11] : memref<8x128xf32, #tpu.memory_space<vmem>>, vector<8x128xf32>
      %15 = vector.shape_cast %14 : vector<8x128xf32> to vector<1x8x128xf32>
      %c0_12 = arith.constant 0 : index
      %c0_13 = arith.constant 0 : index
      %c0_14 = arith.constant 0 : index
      %16 = vector.load %arg4[%c0_12, %c0_13, %c0_14] : memref<1x8x128xf32, #tpu.memory_space<vmem>>, vector<1x8x128xf32>
      tpu.vector_store %arg4[%c0_12, %c0_13, %c0_14], %15 {strides = array<i32>} : memref<1x8x128xf32, #tpu.memory_space<vmem>>, vector<1x8x128xf32>,
    } else {
    }
    return
  }
  func.func @transform_0(%arg0: i32, %arg1: i32) -> (i32, i32) {
    %c1_i32 = arith.constant 1 : i32
    %0 = arith.muli %arg0, %c1_i32 : i32
    %1 = arith.addi %0, %arg1 : i32
    %c0_i32 = arith.constant 0 : i32
    %2 = arith.minsi %1, %c0_i32 : i32
    %c0_i32_0 = arith.constant 0 : i32
    %c0_i32_1 = arith.constant 0 : i32
    return %2, %c0_i32_0 : i32, i32
  }
  func.func @transform_1(%arg0: i32, %arg1: i32) -> (i32, i32) {
    %c1_i32 = arith.constant 1 : i32
    %0 = arith.muli %arg0, %c1_i32 : i32
    %1 = arith.addi %0, %arg1 : i32
    %c0_i32 = arith.constant 0 : i32
    %2 = arith.minsi %1, %c0_i32 : i32
    %c0_i32_0 = arith.constant 0 : i32
    %c0_i32_1 = arith.constant 0 : i32
    return %2, %c0_i32_0 : i32, i32
  }
  func.func @transform_2(%arg0: i32, %arg1: i32) -> (i32, i32, i32) {
    %c0_i32 = arith.constant 0 : i32
    %c0_i32_0 = arith.constant 0 : i32
    %c0_i32_1 = arith.constant 0 : i32
    return %arg0, %c0_i32, %c0_i32_0 : i32, i32, i32
  }
}

</mosaic_0001>

<bundles_post_ra>
// kernel: tpu_custom_call.1
= control target key start
LH: loop header
LB: loop body
LE: loop exit
PB: predicated region body
PF: predicated region fallthrough
CT: control target
= control target key end

     0   :  { %7 = vsyncpa [#allocation4], 0  ;;  %s233_s0 = inlined_call_operand.hbm [shape: f32[16,128], index: 0, kind: input, shape index: {}]   ;;  %s234_s1 = inlined_call_operand.hbm [shape: f32[16,128], index: 1, kind: input, shape index: {}]   ;;  %s235_s2 = inlined_call_operand.hbm [shape: f32[1,8,128], index: 2, kind: output, shape index: {}]  }
   0x1   :  { %8 = vsyncpa [#allocation7], 0 }
   0x2   :  { %9 = vsyncpa [#allocation5], 0  ;;  %s177_s9 = smov [#allocation3]   ;;  %s105_s13 = scalar_lea.hbm %s233_s0, 256 }
   0x3   :  { %s21_s10 = sshll.u32 %s177_s9, 4  ;;  %p106_p0 = scmp.ne.s32.totalorder %s233_s0, %s105_s13  ;;  %s22_s10 = int_to_ptr.vmem [resolvable:$true] %s21_s10 }
   0x4   :  { %p109_p1 = scmp.lt.u32.totalorder %s105_s13, %s233_s0 }
   0x6   :  { %p111_p2 = pnand %p109_p1, %p106_p0 }
   0x8   :  { %114 = shalt.err (!%p111_p2)
}
   0x9   :  { %s115_s18 = scalar_lea.vmem %s22_s10, 256  ;;  %p120_p4 = scmp.lt.s32.totalorder %s22_s10, %s22_s10 }
   0xa   :  { %p116_p3 = scmp.ne.s32.totalorder %s22_s10, %s115_s18  ;;  %p121_p5 = scmp.lt.s32.totalorder %s115_s18, %s115_s18 }
   0xc   :  { %p122_p6 = por %p121_p5, %p120_p4 }
   0xe   :  { %p123_p7 = pnand %p122_p6, %p116_p3 }
  0x10   :  { %126 = shalt.err (!%p123_p7)
}
  0x11   :  { %s178_s19 = smov 128   ;;  %s179_s20 = smov 8  }
  0x12   :  { %27 = dma.hbm_to_vmem [thread:$0]  %s233_s0, 256, %s22_s10, [#allocation4], %s178_s19, %s178_s19, %s179_s20  }
  0x13   :  { %s180_s23 = smov [#allocation6]   ;;  %s127_s27 = scalar_lea.hbm %s234_s1, 256 }
  0x14   :  { %s39_s24 = sshll.u32 %s180_s23, 4  ;;  %p128_p8 = scmp.ne.s32.totalorder %s234_s1, %s127_s27  ;;  %s40_s24 = int_to_ptr.vmem [resolvable:$true] %s39_s24 }
  0x15   :  { %p131_p9 = scmp.lt.u32.totalorder %s127_s27, %s234_s1 }
  0x17   :  { %p133_p10 = pnand %p131_p9, %p128_p8 }
  0x19   :  { %136 = shalt.err (!%p133_p10)
}
  0x1a   :  { %s137_s4 = scalar_lea.vmem %s40_s24, 256  ;;  %p142_p12 = scmp.lt.s32.totalorder %s40_s24, %s40_s24 }
  0x1b   :  { %p138_p11 = scmp.ne.s32.totalorder %s40_s24, %s137_s4  ;;  %p143_p13 = scmp.lt.s32.totalorder %s137_s4, %s137_s4 }
  0x1d   :  { %p144_p0 = por %p143_p13, %p142_p12 }
  0x1f   :  { %p145_p1 = pnand %p144_p0, %p138_p11 }
  0x21   :  { %148 = shalt.err (!%p145_p1)
}
  0x22   :  { %45 = dma.hbm_to_vmem [thread:$0]  %s234_s1, 256, %s40_s24, [#allocation7], %s178_s19, %s178_s19, %s179_s20  }
  0x23   :  { %171 = dma.done.wait [#allocation4], 256  }
  0x24   :  { %172 = vsyncadd [#allocation4], 4294967040 }
  0x25   :  { %173 = dma.done.wait [#allocation7], 256  }
  0x26   :  { %174 = vsyncadd [#allocation7], 4294967040  ;;  %v65_v0 = vld [vmem:[#allocation3] sm:$0xff]  ;;  %v66_v1 = vld [vmem:[#allocation3 + $0x8] sm:$0xff]  ;;  %s181_s6 = smov [#allocation8]  }
  0x27   :  { %v67_v2 = vld [vmem:[#allocation6] sm:$0xff]  ;;  %v68_v3 = vld [vmem:[#allocation6 + $0x8] sm:$0xff]  ;;  %s86_s7 = sshll.u32 %s181_s6, 4  ;;  %s87_s7 = int_to_ptr.vmem [resolvable:$true] %s86_s7 }
  0x28   :  { %v69_v4 = vsub.f32 %v65_v0, %v67_v2  ;;  %v70_v5 = vsub.f32 %v66_v1, %v68_v3  ;;  %s149_s8 = scalar_lea.vmem %s87_s7, 128  ;;  %p154_p3 = scmp.lt.s32.totalorder %s87_s7, %s87_s7 }
  0x29   :  { %p150_p2 = scmp.ne.s32.totalorder %s87_s7, %s149_s8  ;;  %p155_p4 = scmp.lt.s32.totalorder %s149_s8, %s149_s8 }
  0x2a   :  { %v72_v6 = vadd.f32 %v70_v5, %v69_v4 }
  0x2b   :  { %p156_p5 = por %p155_p4, %p154_p3 }
  0x2c   :  { %79 = vst [vmem:[#allocation8] sm:$0xff] %v72_v6 }
  0x2d   :  { %p157_p6 = pnand %p156_p5, %p150_p2 }
  0x2f   :  { %160 = shalt.err (!%p157_p6)
}
  0x30   :  { %s161_s10 = scalar_lea.hbm %s235_s2, 128 }
  0x31   :  { %p162_p7 = scmp.ne.s32.totalorder %s235_s2, %s161_s10  ;;  %p165_p8 = scmp.lt.u32.totalorder %s161_s10, %s235_s2 }
  0x33   :  { %p167_p9 = pnand %p165_p8, %p162_p7 }
  0x35   :  { %170 = shalt.err (!%p167_p9)
}
  0x36   :  { %89 = dma.vmem_to_hbm [thread:$0]  %s87_s7, 128, %s235_s2, [#allocation5]  }
  0x37   :  { %175 = dma.done.wait [#allocation5], 128  }
  0x38   :  { %176 = vsyncadd [#allocation5], 4294967168 }
  0x39   :  { %93 = vsyncpa [#allocation4], 1 }
  0x3a   :  { %94 = vsyncpa [#allocation7], 1 }
  0x3b   :  { %95 = vsyncpa [#allocation5], 1 }

</bundles_post_ra>
